<compile_context>
chip_gen: v7x
topology: tpu7x:2x2x1
jax: 0.10.0
libtpu: 0.0.40
codegen_flags: <defaults>
</compile_context>

<pallas_src>
import functools

import jax
import jax.numpy as jnp
from jax.experimental import pallas as pl
from jax.experimental.pallas import tpu as pltpu


def mlp_kernel(x_ref, w1_ref, b1_ref, w2_ref, b2_ref, o_ref):
    # hidden = relu(x @ W1 + b1)   -- MXU matmul, f32 accumulation
    h = jnp.dot(x_ref[...], w1_ref[...], preferred_element_type=jnp.float32)
    h = jnp.maximum(h + b1_ref[...], 0.0)          # bias broadcast + ReLU on VPU
    # out = hidden @ W2 + b2       -- lane-dense (128-padded) output tile
    o = jnp.dot(h, w2_ref[...], preferred_element_type=jnp.float32)
    o_ref[...] = o + b2_ref[...]


def _round_up(x, m):
    return (x + m - 1) // m * m


@functools.partial(jax.jit, static_argnames=("tb",))
def mlp_forward(x, w1, b1, w2, b2, *, tb=512):
    """y = relu(x @ w1 + b1) @ w2 + b2, fused in one pallas_call."""
    B, D_in = x.shape
    H = w1.shape[1]
    n_out = w2.shape[1]

    # --- Lane-pad output features to a multiple of 128 (zero columns). ---
    n_pad = _round_up(n_out, 128)
    if n_pad != n_out:
        w2 = jnp.pad(w2, ((0, 0), (0, n_pad - n_out)))
        b2 = jnp.pad(b2, ((0, 0), (0, n_pad - n_out)))

    # --- 8-aligned batch tiles; tile the batch with a 1-D grid. ---
    tb_eff = min(tb, _round_up(B, 8))
    b_pad = _round_up(B, tb_eff)
    if b_pad != B:
        x = jnp.pad(x, ((0, b_pad - B), (0, 0)))

    grid = (b_pad // tb_eff,)

    flops = 2 * b_pad * (D_in * H + H * n_pad)
    bytes_accessed = 4 * (b_pad * D_in + D_in * H + H + H * n_pad + n_pad
                          + b_pad * n_pad)

    out = pl.pallas_call(
        mlp_kernel,
        out_shape=jax.ShapeDtypeStruct((b_pad, n_pad), jnp.float32),
        grid_spec=pltpu.PrefetchScalarGridSpec(
            num_scalar_prefetch=0,
            grid=grid,
            in_specs=[
                pl.BlockSpec((tb_eff, D_in), lambda i: (i, 0)),  # x: row tiles
                pl.BlockSpec((D_in, H), lambda i: (0, 0)),       # W1: resident
                pl.BlockSpec((1, H), lambda i: (0, 0)),          # b1: resident
                pl.BlockSpec((H, n_pad), lambda i: (0, 0)),      # W2: resident (padded)
                pl.BlockSpec((1, n_pad), lambda i: (0, 0)),      # b2: resident (padded)
            ],
            out_specs=pl.BlockSpec((tb_eff, n_pad), lambda i: (i, 0)),
        ),
        compiler_params=pltpu.CompilerParams(
            dimension_semantics=("parallel",),   # shard batch tiles across TCs (v7x)
        ),
        cost_estimate=pl.CostEstimate(
            flops=flops, transcendentals=0, bytes_accessed=bytes_accessed),
    )(x, w1, b1, w2, b2)

    # Drop batch padding rows and the zero-padded output lanes.
    return out[:B, :n_out]


def xavier_uniform(key, fan_in, fan_out, shape):
    # matches torch.nn.init.xavier_uniform_ (gain=1)
    limit = jnp.sqrt(6.0 / (fan_in + fan_out))
    return jax.random.uniform(key, shape, jnp.float32, -limit, limit)


def linear_bias_init(key, fan_in, shape):
    # matches PyTorch nn.Linear default bias init: U(-1/sqrt(fan_in), 1/sqrt(fan_in))
    bound = 1.0 / jnp.sqrt(jnp.float32(fan_in))
    return jax.random.uniform(key, shape, jnp.float32, -bound, bound)


if __name__ == "__main__":
    # Module config: input_shape=(D_in,), outputs_count=n_out
    D_in = 32
    HIDDEN = 256
    N_OUT = 8
    B = 4

    key = jax.random.PRNGKey(0)
    k_x, k_w1, k_b1, k_w2, k_b2, k_x2 = jax.random.split(key, 6)

    x = jax.random.normal(k_x, (B, D_in), jnp.float32)

    # Parameters (deterministic, Xavier-uniform weights as in the module's __init__).
    w1 = xavier_uniform(k_w1, D_in, HIDDEN, (D_in, HIDDEN))    # transpose of torch (256, D_in)
    b1 = linear_bias_init(k_b1, D_in, (1, HIDDEN))
    w2 = xavier_uniform(k_w2, HIDDEN, N_OUT, (HIDDEN, N_OUT))  # transpose of torch (n_out, 256)
    b2 = linear_bias_init(k_b2, HIDDEN, (1, N_OUT))

    # Small-batch path (single grid step).
    out = mlp_forward(x, w1, b1, w2, b2)
    jax.block_until_ready(out)
    ref = jnp.maximum(x @ w1 + b1, 0.0) @ w2 + b2
    assert out.shape == (B, N_OUT)
    assert jnp.allclose(out, ref, atol=1e-5, rtol=1e-5)

    # Larger, non-multiple batch exercises the tiled grid + padding path.
    B2 = 300
    x2 = jax.random.normal(k_x2, (B2, D_in), jnp.float32)
    out2 = mlp_forward(x2, w1, b1, w2, b2, tb=128)
    jax.block_until_ready(out2)
    ref2 = jnp.maximum(x2 @ w1 + b1, 0.0) @ w2 + b2
    assert out2.shape == (B2, N_OUT)
    assert jnp.allclose(out2, ref2, atol=1e-5, rtol=1e-5)

    print("KERNEL_OK")
</pallas_src>

<mosaic_0001>
module attributes {stable_mosaic.version = 11 : i64} {
  func.func @mlp_kernel(%arg0: i32, %arg1: memref<8x32xf32, #tpu.memory_space<vmem>>, %arg2: memref<32x256xf32, #tpu.memory_space<vmem>>, %arg3: memref<1x256xf32, #tpu.memory_space<vmem>>, %arg4: memref<256x128xf32, #tpu.memory_space<vmem>>, %arg5: memref<1x128xf32, #tpu.memory_space<vmem>>, %arg6: memref<8x128xf32, #tpu.memory_space<vmem>>) attributes {dimension_semantics = [#tpu.dimension_semantics<parallel>], iteration_bounds = array<i64: 1>, scalar_prefetch = 0 : i64, scratch_operands = 0 : i64, tpu.core_type = #tpu.core_type<tc>, window_params = [{transform_indices = @transform_0, window_bounds = array<i64: 8, 32>}, {pipeline_mode = #tpu.pipeline_mode<synchronous>, transform_indices = @transform_1, window_bounds = array<i64: 32, 256>}, {pipeline_mode = #tpu.pipeline_mode<synchronous>, transform_indices = @transform_2, window_bounds = array<i64: 1, 256>}, {pipeline_mode = #tpu.pipeline_mode<synchronous>, transform_indices = @transform_3, window_bounds = array<i64: 256, 128>}, {pipeline_mode = #tpu.pipeline_mode<synchronous>, transform_indices = @transform_4, window_bounds = array<i64: 1, 128>}, {transform_indices = @transform_5, window_bounds = array<i64: 8, 128>}]} {
    %c0 = arith.constant 0 : index
    %c0_0 = arith.constant 0 : index
    %0 = vector.load %arg1[%c0, %c0_0] : memref<8x32xf32, #tpu.memory_space<vmem>>, vector<8x32xf32>
    %c0_1 = arith.constant 0 : index
    %c0_2 = arith.constant 0 : index
    %1 = vector.load %arg2[%c0_1, %c0_2] : memref<32x256xf32, #tpu.memory_space<vmem>>, vector<32x256xf32>
    %cst = arith.constant dense<0.000000e+00> : vector<8x256xf32>
    %2 = tpu.matmul %0, %1, %cst {dimension_numbers = #tpu.dot_dimension_numbers<[1], [0], [0], [1], [0, 0, 1, 1], [], []>} : vector<8x32xf32>, vector<32x256xf32>, vector<8x256xf32> -> vector<8x256xf32>
    %c0_3 = arith.constant 0 : index
    %c0_4 = arith.constant 0 : index
    %3 = vector.load %arg3[%c0_3, %c0_4] : memref<1x256xf32, #tpu.memory_space<vmem>>, vector<1x256xf32>
    %4 = vector.broadcast %3 : vector<1x256xf32> to vector<8x256xf32>
    %5 = arith.addf %2, %4 : vector<8x256xf32>
    %cst_5 = arith.constant 0.000000e+00 : f32
    %6 = vector.broadcast %cst_5 : f32 to vector<8x256xf32>
    %7 = arith.maximumf %5, %6 : vector<8x256xf32>
    %c0_6 = arith.constant 0 : index
    %c0_7 = arith.constant 0 : index
    %8 = vector.load %arg4[%c0_6, %c0_7] : memref<256x128xf32, #tpu.memory_space<vmem>>, vector<256x128xf32>
    %cst_8 = arith.constant dense<0.000000e+00> : vector<8x128xf32>
    %9 = tpu.matmul %7, %8, %cst_8 {dimension_numbers = #tpu.dot_dimension_numbers<[1], [0], [0], [1], [0, 0, 1, 1], [], []>} : vector<8x256xf32>, vector<256x128xf32>, vector<8x128xf32> -> vector<8x128xf32>
    %c0_9 = arith.constant 0 : index
    %c0_10 = arith.constant 0 : index
    %10 = vector.load %arg5[%c0_9, %c0_10] : memref<1x128xf32, #tpu.memory_space<vmem>>, vector<1x128xf32>
    %11 = vector.broadcast %10 : vector<1x128xf32> to vector<8x128xf32>
    %12 = arith.addf %9, %11 : vector<8x128xf32>
    %c0_11 = arith.constant 0 : index
    %c0_12 = arith.constant 0 : index
    %13 = vector.load %arg6[%c0_11, %c0_12] : memref<8x128xf32, #tpu.memory_space<vmem>>, vector<8x128xf32>
    tpu.vector_store %arg6[%c0_11, %c0_12], %12 {strides = array<i32>} : memref<8x128xf32, #tpu.memory_space<vmem>>, vector<8x128xf32>,
    return
  }
  func.func @transform_0(%arg0: i32) -> (i32, i32) {
    %c0_i32 = arith.constant 0 : i32
    %c0_i32_0 = arith.constant 0 : i32
    return %arg0, %c0_i32 : i32, i32
  }
  func.func @transform_1(%arg0: i32) -> (i32, i32) {
    %c0_i32 = arith.constant 0 : i32
    %c0_i32_0 = arith.constant 0 : i32
    %c0_i32_1 = arith.constant 0 : i32
    return %c0_i32, %c0_i32_0 : i32, i32
  }
  func.func @transform_2(%arg0: i32) -> (i32, i32) {
    %c0_i32 = arith.constant 0 : i32
    %c0_i32_0 = arith.constant 0 : i32
    %c0_i32_1 = arith.constant 0 : i32
    return %c0_i32, %c0_i32_0 : i32, i32
  }
  func.func @transform_3(%arg0: i32) -> (i32, i32) {
    %c0_i32 = arith.constant 0 : i32
    %c0_i32_0 = arith.constant 0 : i32
    %c0_i32_1 = arith.constant 0 : i32
    return %c0_i32, %c0_i32_0 : i32, i32
  }
  func.func @transform_4(%arg0: i32) -> (i32, i32) {
    %c0_i32 = arith.constant 0 : i32
    %c0_i32_0 = arith.constant 0 : i32
    %c0_i32_1 = arith.constant 0 : i32
    return %c0_i32, %c0_i32_0 : i32, i32
  }
  func.func @transform_5(%arg0: i32) -> (i32, i32) {
    %c0_i32 = arith.constant 0 : i32
    %c0_i32_0 = arith.constant 0 : i32
    return %arg0, %c0_i32 : i32, i32
  }
}

</mosaic_0001>

<bundles_post_ra>
// kernel: mlp_forward.1
= control target key start
LH: loop header
LB: loop body
LE: loop exit
PB: predicated region body
PF: predicated region fallthrough
CT: control target
= control target key end

     0   :  { %v310_v3 = vmov 0.0   ;;  %vm41_vm0 = vcmask 261120   ;;  %v31_v62 = vlaneseq  ;;  %s473_s1 = inlined_call_operand.vmem [shape: f32[32,256], index: 1, kind: input, shape index: {}]   ;;  %s474_s3 = inlined_call_operand.vmem [shape: f32[256,128], index: 3, kind: input, shape index: {}]   ;;  %s475_s0 = inlined_call_operand.vmem [shape: f32[8,32], index: 0, kind: input, shape index: {}]   ;;  %s476_s2 = inlined_call_operand.vmem [shape: f32[1,256], index: 2, kind: input, shape index: {}]   ;;  %s477_s4 = inlined_call_operand.vmem [shape: f32[1,128], index: 4, kind: input, shape index: {}]   ;;  %s478_s5 = inlined_call_operand.vmem [shape: f32[8,128], index: 5, kind: output, shape index: {}]  }
   0x1   :  { %v22_v0 = vld [vmem:[%s473_s1 + $0x8] sm:$0xff]  ;;  %v24_v1 = vld [vmem:[%s473_s1 + $0x18] sm:$0xff]  ;;  %v21_v2 = vld [vmem:[%s473_s1] sm:$0xff]  ;;  %109 = vmatprep.mubr.f32.mxu0 %v310_v3 }
   0x2   :  { %v269_v4 = vpack.c.bf16 %v24_v1, %v22_v0  ;;  %v23_v5 = vld [vmem:[%s473_s1 + $0x10] sm:$0xff]  ;;  %v26_v6 = vld [vmem:[%s473_s1 + $0x28] sm:$0xff]  ;;  %v28_v7 = vld [vmem:[%s473_s1 + $0x38] sm:$0xff]  ;;  %v32_v63 = vshrl.u32 %v31_v62, 7 }
   0x3   :  { %v271_v8 = vpack.c.bf16 %v23_v5, %v21_v2  ;;  %v273_v9 = vpack.c.bf16 %v28_v7, %v26_v6  ;;  %v25_v10 = vld [vmem:[%s473_s1 + $0x20] sm:$0xff]  ;;  %v27_v11 = vld [vmem:[%s473_s1 + $0x30] sm:$0xff]  ;;  %v135_v13 = vld [vmem:[%s474_s3 + $0x88] sm:$0xff] }
   0x4   :  { %270 = vmatprep.subr.bf16.mxu0 %v269_v4  ;;  %v134_v12 = vld [vmem:[%s474_s3 + $0x80] sm:$0xff]  ;;  %v275_v15 = vpack.c.bf16 %v27_v11, %v25_v10  ;;  %v119_v17 = vld [vmem:[%s474_s3 + $0x8] sm:$0xff]  ;;  %v136_v18 = vld [vmem:[%s474_s3 + $0x90] sm:$0xff]  ;;  %v33_v0 = vsub.s32 0, %v32_v63  ;;  %v37_v2 = vsub.s32 1, %v32_v63 }
   0x5   :  { %v118_v14 = vld [vmem:[%s474_s3] sm:$0xff]  ;;  %272 = vmatpush1.bf16.msra.mxu0 %v271_v8  ;;  %v277_v16 = vpack.c.bf16 %v135_v13, %v134_v12  ;;  %v137_v19 = vld [vmem:[%s474_s3 + $0x98] sm:$0xff]  ;;  %v120_v22 = vld [vmem:[%s474_s3 + $0x10] sm:$0xff] }
   0x6   :  { %274 = vmatprep.subr.bf16.mxu0 %v273_v9  ;;  %v279_v20 = vpack.c.bf16 %v119_v17, %v118_v14  ;;  %v281_v21 = vpack.c.bf16 %v137_v19, %v136_v18  ;;  %v121_v23 = vld [vmem:[%s474_s3 + $0x18] sm:$0xff]  ;;  %v138_v24 = vld [vmem:[%s474_s3 + $0xa0] sm:$0xff]  ;;  %v139_v25 = vld [vmem:[%s474_s3 + $0xa8] sm:$0xff] }
   0x7   :  { %278 = vmatprep.subr.bf16.mxu1 %v277_v16  ;;  %v283_v26 = vpack.c.bf16 %v121_v23, %v120_v22  ;;  %v20_v27 = vld [vmem:[%s475_s0] sm:$0xff]  ;;  %v285_v28 = vpack.c.bf16 %v139_v25, %v138_v24  ;;  %v123_v30 = vld [vmem:[%s474_s3 + $0x28] sm:$0xff]  ;;  %v140_v31 = vld [vmem:[%s474_s3 + $0xb0] sm:$0xff] }
   0x8   :  { %280 = vmatpush3.bf16.msra.mxu1 %v279_v20  ;;  %v122_v29 = vld [vmem:[%s474_s3 + $0x20] sm:$0xff]  ;;  %v141_v32 = vld [vmem:[%s474_s3 + $0xb8] sm:$0xff]  ;;  %v124_v35 = vld [vmem:[%s474_s3 + $0x30] sm:$0xff] }
   0x9   :  { %276 = vmatpush1.bf16.msra.mxu0 %v275_v15  ;;  %282 = vmatprep.subr.bf16.mxu1 %v281_v21  ;;  %v287_v33 = vpack.c.bf16 %v123_v30, %v122_v29  ;;  %v289_v34 = vpack.c.bf16 %v141_v32, %v140_v31  ;;  %v125_v36 = vld [vmem:[%s474_s3 + $0x38] sm:$0xff]  ;;  %v142_v37 = vld [vmem:[%s474_s3 + $0xc0] sm:$0xff]  ;;  %v143_v38 = vld [vmem:[%s474_s3 + $0xc8] sm:$0xff] }
   0xa   :  { %v291_v39 = vpack.c.bf16 %v125_v36, %v124_v35  ;;  %v293_v40 = vpack.c.bf16 %v143_v38, %v142_v37  ;;  %v126_v41 = vld [vmem:[%s474_s3 + $0x40] sm:$0xff]  ;;  %v127_v42 = vld [vmem:[%s474_s3 + $0x48] sm:$0xff]  ;;  %v144_v43 = vld [vmem:[%s474_s3 + $0xd0] sm:$0xff] }
   0xb   :  { %v145_v44 = vld [vmem:[%s474_s3 + $0xd8] sm:$0xff]  ;;  %v295_v45 = vpack.c.bf16 %v127_v42, %v126_v41  ;;  %v128_v47 = vld [vmem:[%s474_s3 + $0x50] sm:$0xff]  ;;  %v146_v49 = vld [vmem:[%s474_s3 + $0xe0] sm:$0xff] }
   0xc   :  { %232 = vmatmul.mubr.msk.f32.vlgmr.msra.gmra.mrb[0].mxu0 %vm41_vm0, %v20_v27  ;;  %284 = vmatpush3.bf16.msra.mxu1 %v283_v26  ;;  %v297_v46 = vpack.c.bf16 %v145_v44, %v144_v43  ;;  %v129_v48 = vld [vmem:[%s474_s3 + $0x58] sm:$0xff]  ;;  %v147_v50 = vld [vmem:[%s474_s3 + $0xe8] sm:$0xff]  ;;  %v130_v53 = vld [vmem:[%s474_s3 + $0x60] sm:$0xff] }
   0xd   :  { %286 = vmatprep.subr.bf16.mxu1 %v285_v28  ;;  %v299_v51 = vpack.c.bf16 %v129_v48, %v128_v47  ;;  %v301_v52 = vpack.c.bf16 %v147_v50, %v146_v49  ;;  %v131_v54 = vld [vmem:[%s474_s3 + $0x68] sm:$0xff]  ;;  %v148_v56 = vld [vmem:[%s474_s3 + $0xf0] sm:$0xff]  ;;  %v149_v57 = vld [vmem:[%s474_s3 + $0xf8] sm:$0xff] }
   0xe   :  { %v303_v55 = vpack.c.bf16 %v131_v54, %v130_v53  ;;  %v305_v58 = vpack.c.bf16 %v149_v57, %v148_v56  ;;  %v132_v59 = vld [vmem:[%s474_s3 + $0x70] sm:$0xff]  ;;  %v133_v60 = vld [vmem:[%s474_s3 + $0x78] sm:$0xff]  ;;  %v29_v1 = vld [vmem:[%s476_s2] sm:$0x3] }
   0xf   :  { %v307_v61 = vpack.c.bf16 %v133_v60, %v132_v59  ;;  %v34_v3 = vrot.slane %v29_v1, %v33_v0  ;;  %v38_v4 = vrot.slane %v29_v1, %v37_v2  ;;  %v233_v12 = vld [vmem:[%s477_s4] ss:$0 sm:$0xff] }
  0x10   :  { %288 = vmatpush3.bf16.msra.mxu1 %v287_v33 }
  0x11   :  { %290 = vmatprep.subr.bf16.mxu1 %v289_v34 }
  0x14   :  { %292 = vmatpush3.bf16.msra.mxu1 %v291_v39 }
  0x15   :  { %294 = vmatprep.subr.bf16.mxu1 %v293_v40 }
  0x18   :  { %296 = vmatpush3.bf16.msra.mxu1 %v295_v45 }
  0x19   :  { %298 = vmatprep.subr.bf16.mxu1 %v297_v46 }
  0x1c   :  { %300 = vmatpush3.bf16.msra.mxu1 %v299_v51 }
  0x1d   :  { %302 = vmatprep.subr.bf16.mxu1 %v301_v52 }
  0x20   :  { %304 = vmatpush3.bf16.msra.mxu1 %v303_v55 }
  0x21   :  { %306 = vmatprep.subr.bf16.mxu1 %v305_v58 }
  0x24   :  { %308 = vmatpush3.bf16.msra.mxu1 %v307_v61 }
  0xdf   :  { %v111_v5 = vpop.f32.mrb[0].mxu0 }
  0xe0   :  { %v112_v6 = vadd.f32 %v111_v5, %v34_v3  ;;  %v113_v7 = vpop.f32.mrb[1].mxu0 }
  0xe1   :  { %v114_v8 = vadd.f32 %v113_v7, %v38_v4 }
  0xe2   :  { %v116_v10 = vmax.f32 %v112_v6, 0.0 }
  0xe3   :  { %v117_v9 = vmax.f32 %v114_v8, 0.0 }
  0xe5   :  { %221 = vmatprep.mubr.f32.mxu1 %v117_v9 }
  0xe6   :  { %222 = vmatmul.mubr.f32.vlgmr.msra.gmra.mrb[0].mxu1 %v116_v10 }
 0x1b9   :  { %v266_v11 = vpop.f32.mrb[0].mxu1 }
 0x1ba   :  { %v267_v13 = vpop.f32.mrb[1].mxu1 }
 0x1bb   :  { %v268_v14 = vadd.f32 %v267_v13, %v266_v11 }
 0x1bd   :  { %v224_v15 = vadd.f32 %v268_v14, %v233_v12 }
 0x1bf   :  { %227 = vst [vmem:[%s478_s5] sm:$0xff] %v224_v15 }

</bundles_post_ra>
